<compile_context>
chip_gen: v7x
topology: tpu7x:2x2x1
jax: 0.10.0
libtpu: 0.0.40
codegen_flags: <defaults>
</compile_context>

<pallas_src>
import functools

import jax
import jax.numpy as jnp
from jax.experimental import pallas as pl
from jax.experimental.pallas import tpu as pltpu


# --------------------------------------------------------------------------- #
# Kernels
# --------------------------------------------------------------------------- #
def _conv1_kernel(adj_ref, xs_ref, w1_ref, b1_ref, dinv_ref, h1s_ref):
    # adj_ref : (TM, Np)  bf16   row tile of (A + I), indexed [dst, src]
    # xs_ref  : (Np, Din) f32    D^{-1/2} X                    (resident)
    # w1_ref  : (Din, H)  f32
    # b1_ref  : (1, H)    f32
    # dinv_ref: (TM, 1)   f32    D^{-1/2} for this row tile
    # h1s_ref : (TM, H)   bf16   output: D^{-1/2} * relu(conv1(X))
    xw = jnp.dot(xs_ref[...], w1_ref[...], preferred_element_type=jnp.float32)
    agg = jnp.dot(adj_ref[...], xw.astype(jnp.bfloat16),
                  preferred_element_type=jnp.float32)          # bf16 MXU, f32 acc
    h1 = jnp.maximum(dinv_ref[...] * agg + b1_ref[...], 0.0)   # f32 element-wise
    # Pre-scale by D^{-1/2} so stage 2 needs no extra N^2 or N*H scaling.
    h1s_ref[...] = (dinv_ref[...] * h1).astype(jnp.bfloat16)


def _conv2_pool_fc_kernel(adj_ref, h1s_ref, w2_ref, b2_ref, dinv_ref,
                          pool_ref, wf_ref, bf_ref, o_ref, acc_ref):
    # adj_ref : (TM, Np) bf16 ; h1s_ref: (Np, H) bf16 (resident)
    # pool_ref: (G, TM)  f32  columns of the mean-pool matrix for this row tile
    # acc_ref : (G, H)   f32  pooled accumulator (scratch, persists across grid)
    i = pl.program_id(0)

    @pl.when(i == 0)
    def _():
        acc_ref[...] = jnp.zeros_like(acc_ref)

    hw = jnp.dot(h1s_ref[...], w2_ref[...].astype(jnp.bfloat16),
                 preferred_element_type=jnp.float32)           # (Np, H) f32
    agg = jnp.dot(adj_ref[...], hw.astype(jnp.bfloat16),
                  preferred_element_type=jnp.float32)          # (TM, H) f32
    h2 = dinv_ref[...] * agg + b2_ref[...]                     # f32 element-wise
    acc_ref[...] += jnp.dot(pool_ref[...], h2,
                            preferred_element_type=jnp.float32)

    @pl.when(i == pl.num_programs(0) - 1)
    def _():
        out = jnp.dot(acc_ref[...], wf_ref[...],
                      preferred_element_type=jnp.float32) + bf_ref[...]
        o_ref[...] = out.astype(o_ref.dtype)


# --------------------------------------------------------------------------- #
# Wrapper
# --------------------------------------------------------------------------- #
def _round_up(x, m):
    return ((x + m - 1) // m) * m


def _pick_row_tile(n_pad):
    # Largest row tile whose single bf16 (TM, Np) adjacency buffer stays <= 8 MiB
    # (x2 for double buffering -> <= 16 MiB), so it also fits v7x's 64 MiB VMEM
    # alongside the resident arrays.
    budget_rows = max(128, (8 * 1024 * 1024) // (n_pad * 2))
    for tm in (512, 384, 256, 128):
        if tm <= budget_rows and n_pad % tm == 0:
            return tm
    return 128  # n_pad is always a multiple of 128


@functools.partial(jax.jit, static_argnames=("num_graphs",))
def simple_gcn_forward(node_idx, edge_index, batch, params, num_graphs):
    emb_w, w1, b1, w2, b2, wf, bf = params
    n = node_idx.shape[0]
    d_in, hidden = w1.shape
    out_dim = wf.shape[1]

    n_pad = _round_up(n, 128)
    tm = _pick_row_tile(n_pad)
    grid = (n_pad // tm,)

    # ---- glue: embedding lookup (Embedding(1, input_dim)) ----
    x_emb = jnp.take(emb_w, node_idx, axis=0).astype(jnp.float32)       # (N, Din)
    x_emb = jnp.pad(x_emb, ((0, n_pad - n), (0, 0)))

    # ---- glue: dense (A + I) built directly in bf16, degrees from edges ----
    src, dst = edge_index[0], edge_index[1]
    diag = jnp.arange(n)
    adj = jnp.zeros((n_pad, n_pad), jnp.bfloat16).at[dst, src].add(1.0)
    adj = adj.at[diag, diag].add(1.0)                                   # self-loops (real nodes)

    deg = jnp.zeros((n_pad,), jnp.float32).at[dst].add(1.0)
    deg = deg.at[diag].add(1.0)                                         # row-sum of (A + I)
    dinv = jnp.where(deg > 0, jax.lax.rsqrt(deg), 0.0)                  # (Np,), 0 for padding

    xs = x_emb * dinv[:, None]                                          # D^{-1/2} X  (O(N*Din))
    dinv_col = dinv[:, None]                                            # (Np, 1)

    # ---- glue: mean-pool matrix (zero columns for padded nodes) ----
    batch_pad = jnp.pad(batch, (0, n_pad - n), constant_values=-1)
    one_hot = (batch_pad[None, :] == jnp.arange(num_graphs)[:, None]).astype(jnp.float32)
    counts = jnp.maximum(jnp.sum(one_hot, axis=1, keepdims=True), 1.0)
    pool = one_hot / counts                                             # (G, Np)

    b1r = b1.reshape(1, hidden).astype(jnp.float32)
    b2r = b2.reshape(1, hidden).astype(jnp.float32)
    bfr = bf.reshape(1, out_dim).astype(jnp.float32)

    # VMEM budget: double-buffered bf16 adjacency tile + residents + headroom,
    # capped at 64 MiB so the same plan fits a v7x TensorCore.
    adj_buf = 2 * 2 * tm * n_pad * 2
    resident = n_pad * (d_in + 2 * hidden) * 4 + n_pad * hidden * 2
    vmem_limit = int(min(max(adj_buf + resident + (8 << 20), 16 << 20), 64 << 20))

    def full(shape):
        return pl.BlockSpec(shape, lambda *_: (0,) * len(shape))

    # ---- stage 1: H1s = D^{-1/2} * relu( A_hat @ (X W1) + b1 ) -------------
    h1s = pl.pallas_call(
        _conv1_kernel,
        out_shape=jax.ShapeDtypeStruct((n_pad, hidden), jnp.bfloat16),
        grid_spec=pltpu.PrefetchScalarGridSpec(
            num_scalar_prefetch=0,
            grid=grid,
            in_specs=[
                pl.BlockSpec((tm, n_pad), lambda i: (i, 0)),     # adj row tile
                full((n_pad, d_in)),                             # xs (resident)
                full((d_in, hidden)),                            # w1
                full((1, hidden)),                               # b1
                pl.BlockSpec((tm, 1), lambda i: (i, 0)),         # dinv row tile
            ],
            out_specs=pl.BlockSpec((tm, hidden), lambda i: (i, 0)),
        ),
        compiler_params=pltpu.CompilerParams(
            dimension_semantics=("parallel",),
            vmem_limit_bytes=vmem_limit),
    )(adj, xs, w1.astype(jnp.float32), b1r, dinv_col)

    # ---- stage 2: conv2 + global_mean_pool + fc -----------------------------
    out = pl.pallas_call(
        _conv2_pool_fc_kernel,
        out_shape=jax.ShapeDtypeStruct((num_graphs, out_dim), jnp.float32),
        grid_spec=pltpu.PrefetchScalarGridSpec(
            num_scalar_prefetch=0,
            grid=grid,
            in_specs=[
                pl.BlockSpec((tm, n_pad), lambda i: (i, 0)),         # adj row tile
                full((n_pad, hidden)),                               # h1s (resident)
                full((hidden, hidden)),                              # w2
                full((1, hidden)),                                   # b2
                pl.BlockSpec((tm, 1), lambda i: (i, 0)),             # dinv row tile
                pl.BlockSpec((num_graphs, tm), lambda i: (0, i)),    # pool cols for tile
                full((hidden, out_dim)),                             # wf
                full((1, out_dim)),                                  # bf
            ],
            out_specs=pl.BlockSpec((num_graphs, out_dim), lambda i: (0, 0)),
            scratch_shapes=[pltpu.VMEM((num_graphs, hidden), jnp.float32)],
        ),
        compiler_params=pltpu.CompilerParams(
            dimension_semantics=("arbitrary",),   # pooled accumulator across row tiles
            vmem_limit_bytes=vmem_limit),
    )(adj, h1s, w2.astype(jnp.float32), b2r, dinv_col,
      pool, wf.astype(jnp.float32), bfr)
    return out


# --------------------------------------------------------------------------- #
# Plain-JAX reference (f32) for a correctness sanity check
# --------------------------------------------------------------------------- #
def _reference(node_idx, edge_index, batch, params, num_graphs):
    emb_w, w1, b1, w2, b2, wf, bf = params
    n = node_idx.shape[0]
    x = jnp.take(emb_w, node_idx, axis=0)
    src, dst = edge_index[0], edge_index[1]
    adj = jnp.zeros((n, n), jnp.float32).at[dst, src].add(1.0) + jnp.eye(n)
    deg = jnp.sum(adj, axis=1)
    dinv = jnp.where(deg > 0, 1.0 / jnp.sqrt(deg), 0.0)
    a_hat = dinv[:, None] * adj * dinv[None, :]
    h = jnp.maximum(a_hat @ (x @ w1) + b1, 0.0)
    h = a_hat @ (h @ w2) + b2
    one_hot = (batch[None, :] == jnp.arange(num_graphs)[:, None]).astype(jnp.float32)
    pool = one_hot / jnp.maximum(one_hot.sum(1, keepdims=True), 1.0)
    return pool @ h @ wf + bf


def init_params(key, input_dim, hidden_dim, output_dim):
    ks = jax.random.split(key, 6)
    emb_w = jax.random.normal(ks[0], (1, input_dim), jnp.float32)
    w1 = jax.random.normal(ks[1], (input_dim, hidden_dim), jnp.float32) * 0.1
    b1 = jnp.zeros((hidden_dim,), jnp.float32)
    w2 = jax.random.normal(ks[2], (hidden_dim, hidden_dim), jnp.float32) * 0.1
    b2 = jnp.zeros((hidden_dim,), jnp.float32)
    wf = jax.random.normal(ks[3], (hidden_dim, output_dim), jnp.float32) * 0.1
    bf = jax.random.normal(ks[4], (output_dim,), jnp.float32) * 0.1
    return (emb_w, w1, b1, w2, b2, wf, bf)


if __name__ == "__main__":
    input_dim, hidden_dim, output_dim = 8, 32, 4
    num_graphs, nodes_per_graph = 2, 8
    n = num_graphs * nodes_per_graph

    key = jax.random.PRNGKey(0)
    params = init_params(key, input_dim, hidden_dim, output_dim)

    # data.x: node indices into Embedding(1, input_dim) -> all zeros
    node_idx = jnp.zeros((n,), jnp.int32)

    # two undirected ring graphs of 8 nodes each (edges stored in both directions)
    edges = []
    for g in range(num_graphs):
        base = g * nodes_per_graph
        for i in range(nodes_per_graph):
            a_node = base + i
            b_node = base + (i + 1) % nodes_per_graph
            edges.append((a_node, b_node))
            edges.append((b_node, a_node))
    edge_index = jnp.array(edges, jnp.int32).T                      # (2, E)

    batch = jnp.repeat(jnp.arange(num_graphs, dtype=jnp.int32), nodes_per_graph)

    out = simple_gcn_forward(node_idx, edge_index, batch, params, num_graphs)
    jax.block_until_ready(out)
    assert out.shape == (num_graphs, output_dim)

    ref = _reference(node_idx, edge_index, batch, params, num_graphs)
    assert jnp.allclose(out, ref, rtol=5e-2, atol=1e-2), (out, ref)

    print("KERNEL_OK")
</pallas_src>

<mosaic_0001>
module attributes {stable_mosaic.version = 11 : i64} {
  func.func private @main(%arg0: i32) attributes {dimension_semantics = [#tpu.dimension_semantics<core_parallel>], iteration_bounds = array<i64: 2>, tpu.core_type = #tpu.core_type<sc_scalar_subcore>, window_params = []} {
    return
  }
}

module attributes {stable_mosaic.version = 11 : i64} {
  func.func private @main(%arg0: i32) attributes {dimension_semantics = [#tpu.dimension_semantics<core_parallel>], iteration_bounds = array<i64: 2>, tpu.core_type = #tpu.core_type<sc_scalar_subcore>, window_params = []} {
    return
  }
}

module attributes {stable_mosaic.version = 11 : i64} {
  func.func @_conv1_kernel(%arg0: i32, %arg1: memref<128x128xbf16, #tpu.memory_space<vmem>>, %arg2: memref<128x8xf32, #tpu.memory_space<vmem>>, %arg3: memref<8x32xf32, #tpu.memory_space<vmem>>, %arg4: memref<1x32xf32, #tpu.memory_space<vmem>>, %arg5: memref<128x1xf32, #tpu.memory_space<vmem>>, %arg6: memref<128x32xbf16, #tpu.memory_space<vmem>>) attributes {dimension_semantics = [#tpu.dimension_semantics<parallel>], iteration_bounds = array<i64: 1>, scalar_prefetch = 0 : i64, scratch_operands = 0 : i64, tpu.core_type = #tpu.core_type<tc>, window_params = [{transform_indices = @transform_0, window_bounds = array<i64: 128, 128>}, {pipeline_mode = #tpu.pipeline_mode<synchronous>, transform_indices = @transform_1, window_bounds = array<i64: 128, 8>}, {pipeline_mode = #tpu.pipeline_mode<synchronous>, transform_indices = @transform_2, window_bounds = array<i64: 8, 32>}, {pipeline_mode = #tpu.pipeline_mode<synchronous>, transform_indices = @transform_3, window_bounds = array<i64: 1, 32>}, {transform_indices = @transform_4, window_bounds = array<i64: 128, 1>}, {transform_indices = @transform_5, window_bounds = array<i64: 128, 32>}]} {
    %c0 = arith.constant 0 : index
    %c0_0 = arith.constant 0 : index
    %0 = vector.load %arg2[%c0, %c0_0] : memref<128x8xf32, #tpu.memory_space<vmem>>, vector<128x8xf32>
    %c0_1 = arith.constant 0 : index
    %c0_2 = arith.constant 0 : index
    %1 = vector.load %arg3[%c0_1, %c0_2] : memref<8x32xf32, #tpu.memory_space<vmem>>, vector<8x32xf32>
    %cst = arith.constant dense<0.000000e+00> : vector<128x32xf32>
    %2 = tpu.matmul %0, %1, %cst {dimension_numbers = #tpu.dot_dimension_numbers<[1], [0], [0], [1], [0, 0, 1, 1], [], []>} : vector<128x8xf32>, vector<8x32xf32>, vector<128x32xf32> -> vector<128x32xf32>
    %c0_3 = arith.constant 0 : index
    %c0_4 = arith.constant 0 : index
    %3 = vector.load %arg1[%c0_3, %c0_4] : memref<128x128xbf16, #tpu.memory_space<vmem>>, vector<128x128xbf16>
    %4 = arith.truncf %2 : vector<128x32xf32> to vector<128x32xbf16>
    %cst_5 = arith.constant dense<0.000000e+00> : vector<128x32xf32>
    %5 = tpu.matmul %3, %4, %cst_5 {dimension_numbers = #tpu.dot_dimension_numbers<[1], [0], [0], [1], [0, 0, 1, 1], [], []>} : vector<128x128xbf16>, vector<128x32xbf16>, vector<128x32xf32> -> vector<128x32xf32>
    %c0_6 = arith.constant 0 : index
    %c0_7 = arith.constant 0 : index
    %6 = vector.load %arg5[%c0_6, %c0_7] : memref<128x1xf32, #tpu.memory_space<vmem>>, vector<128x1xf32>
    %7 = vector.broadcast %6 : vector<128x1xf32> to vector<128x32xf32>
    %8 = arith.mulf %7, %5 : vector<128x32xf32>
    %c0_8 = arith.constant 0 : index
    %c0_9 = arith.constant 0 : index
    %9 = vector.load %arg4[%c0_8, %c0_9] : memref<1x32xf32, #tpu.memory_space<vmem>>, vector<1x32xf32>
    %10 = vector.broadcast %9 : vector<1x32xf32> to vector<128x32xf32>
    %11 = arith.addf %8, %10 : vector<128x32xf32>
    %cst_10 = arith.constant 0.000000e+00 : f32
    %12 = vector.broadcast %cst_10 : f32 to vector<128x32xf32>
    %13 = arith.maximumf %11, %12 : vector<128x32xf32>
    %c0_11 = arith.constant 0 : index
    %c0_12 = arith.constant 0 : index
    %14 = vector.load %arg5[%c0_11, %c0_12] : memref<128x1xf32, #tpu.memory_space<vmem>>, vector<128x1xf32>
    %15 = vector.broadcast %14 : vector<128x1xf32> to vector<128x32xf32>
    %16 = arith.mulf %15, %13 : vector<128x32xf32>
    %17 = arith.truncf %16 : vector<128x32xf32> to vector<128x32xbf16>
    %c0_13 = arith.constant 0 : index
    %c0_14 = arith.constant 0 : index
    %18 = vector.load %arg6[%c0_13, %c0_14] : memref<128x32xbf16, #tpu.memory_space<vmem>>, vector<128x32xbf16>
    tpu.vector_store %arg6[%c0_13, %c0_14], %17 {strides = array<i32>} : memref<128x32xbf16, #tpu.memory_space<vmem>>, vector<128x32xbf16>,
    return
  }
  func.func @transform_0(%arg0: i32) -> (i32, i32) {
    %c0_i32 = arith.constant 0 : i32
    %c0_i32_0 = arith.constant 0 : i32
    return %arg0, %c0_i32 : i32, i32
  }
  func.func @transform_1(%arg0: i32) -> (i32, i32) {
    %c0_i32 = arith.constant 0 : i32
    %c0_i32_0 = arith.constant 0 : i32
    %c0_i32_1 = arith.constant 0 : i32
    return %c0_i32, %c0_i32_0 : i32, i32
  }
  func.func @transform_2(%arg0: i32) -> (i32, i32) {
    %c0_i32 = arith.constant 0 : i32
    %c0_i32_0 = arith.constant 0 : i32
    %c0_i32_1 = arith.constant 0 : i32
    return %c0_i32, %c0_i32_0 : i32, i32
  }
  func.func @transform_3(%arg0: i32) -> (i32, i32) {
    %c0_i32 = arith.constant 0 : i32
    %c0_i32_0 = arith.constant 0 : i32
    %c0_i32_1 = arith.constant 0 : i32
    return %c0_i32, %c0_i32_0 : i32, i32
  }
  func.func @transform_4(%arg0: i32) -> (i32, i32) {
    %c0_i32 = arith.constant 0 : i32
    %c0_i32_0 = arith.constant 0 : i32
    return %arg0, %c0_i32 : i32, i32
  }
  func.func @transform_5(%arg0: i32) -> (i32, i32) {
    %c0_i32 = arith.constant 0 : i32
    %c0_i32_0 = arith.constant 0 : i32
    return %arg0, %c0_i32 : i32, i32
  }
}

module attributes {stable_mosaic.version = 11 : i64} {
  func.func @_conv2_pool_fc_kernel(%arg0: i32, %arg1: memref<128x128xbf16, #tpu.memory_space<vmem>>, %arg2: memref<128x32xbf16, #tpu.memory_space<vmem>>, %arg3: memref<32x32xf32, #tpu.memory_space<vmem>>, %arg4: memref<1x32xf32, #tpu.memory_space<vmem>>, %arg5: memref<128x1xf32, #tpu.memory_space<vmem>>, %arg6: memref<2x128xf32, #tpu.memory_space<vmem>>, %arg7: memref<32x4xf32, #tpu.memory_space<vmem>>, %arg8: memref<1x4xf32, #tpu.memory_space<vmem>>, %arg9: memref<2x4xf32, #tpu.memory_space<vmem>>, %arg10: memref<2x32xf32, #tpu.memory_space<vmem>>) attributes {dimension_semantics = [#tpu.dimension_semantics<arbitrary>], iteration_bounds = array<i64: 1>, scalar_prefetch = 0 : i64, scratch_operands = 1 : i64, tpu.core_type = #tpu.core_type<tc>, window_params = [{transform_indices = @transform_0, window_bounds = array<i64: 128, 128>}, {pipeline_mode = #tpu.pipeline_mode<synchronous>, transform_indices = @transform_1, window_bounds = array<i64: 128, 32>}, {pipeline_mode = #tpu.pipeline_mode<synchronous>, transform_indices = @transform_2, window_bounds = array<i64: 32, 32>}, {pipeline_mode = #tpu.pipeline_mode<synchronous>, transform_indices = @transform_3, window_bounds = array<i64: 1, 32>}, {transform_indices = @transform_4, window_bounds = array<i64: 128, 1>}, {transform_indices = @transform_5, window_bounds = array<i64: 2, 128>}, {pipeline_mode = #tpu.pipeline_mode<synchronous>, transform_indices = @transform_6, window_bounds = array<i64: 32, 4>}, {pipeline_mode = #tpu.pipeline_mode<synchronous>, transform_indices = @transform_7, window_bounds = array<i64: 1, 4>}, {pipeline_mode = #tpu.pipeline_mode<synchronous>, transform_indices = @transform_8, window_bounds = array<i64: 2, 4>}]} {
    %c0_i32 = arith.constant 0 : i32
    %0 = arith.cmpi eq, %arg0, %c0_i32 : i32
    %1 = arith.extui %0 : i1 to i32
    %c0_i32_0 = arith.constant 0 : i32
    %2 = arith.cmpi ne, %1, %c0_i32_0 : i32
    scf.if %2 {
      %cst_20 = arith.constant 0.000000e+00 : f32
      %24 = vector.broadcast %cst_20 : f32 to vector<2x32xf32>
      %c0_21 = arith.constant 0 : index
      %c0_22 = arith.constant 0 : index
      %25 = vector.load %arg10[%c0_21, %c0_22] : memref<2x32xf32, #tpu.memory_space<vmem>>, vector<2x32xf32>
      tpu.vector_store %arg10[%c0_21, %c0_22], %24 {strides = array<i32>} : memref<2x32xf32, #tpu.memory_space<vmem>>, vector<2x32xf32>,
    } else {
    }
    %c0 = arith.constant 0 : index
    %c0_1 = arith.constant 0 : index
    %3 = vector.load %arg2[%c0, %c0_1] : memref<128x32xbf16, #tpu.memory_space<vmem>>, vector<128x32xbf16>
    %c0_2 = arith.constant 0 : index
    %c0_3 = arith.constant 0 : index
    %4 = vector.load %arg3[%c0_2, %c0_3] : memref<32x32xf32, #tpu.memory_space<vmem>>, vector<32x32xf32>
    %5 = arith.truncf %4 : vector<32x32xf32> to vector<32x32xbf16>
    %cst = arith.constant dense<0.000000e+00> : vector<128x32xf32>
    %6 = tpu.matmul %3, %5, %cst {dimension_numbers = #tpu.dot_dimension_numbers<[1], [0], [0], [1], [0, 0, 1, 1], [], []>} : vector<128x32xbf16>, vector<32x32xbf16>, vector<128x32xf32> -> vector<128x32xf32>
    %c0_4 = arith.constant 0 : index
    %c0_5 = arith.constant 0 : index
    %7 = vector.load %arg1[%c0_4, %c0_5] : memref<128x128xbf16, #tpu.memory_space<vmem>>, vector<128x128xbf16>
    %8 = arith.truncf %6 : vector<128x32xf32> to vector<128x32xbf16>
    %cst_6 = arith.constant dense<0.000000e+00> : vector<128x32xf32>
    %9 = tpu.matmul %7, %8, %cst_6 {dimension_numbers = #tpu.dot_dimension_numbers<[1], [0], [0], [1], [0, 0, 1, 1], [], []>} : vector<128x128xbf16>, vector<128x32xbf16>, vector<128x32xf32> -> vector<128x32xf32>
    %c0_7 = arith.constant 0 : index
    %c0_8 = arith.constant 0 : index
    %10 = vector.load %arg5[%c0_7, %c0_8] : memref<128x1xf32, #tpu.memory_space<vmem>>, vector<128x1xf32>
    %11 = vector.broadcast %10 : vector<128x1xf32> to vector<128x32xf32>
    %12 = arith.mulf %11, %9 : vector<128x32xf32>
    %c0_9 = arith.constant 0 : index
    %c0_10 = arith.constant 0 : index
    %13 = vector.load %arg4[%c0_9, %c0_10] : memref<1x32xf32, #tpu.memory_space<vmem>>, vector<1x32xf32>
    %14 = vector.broadcast %13 : vector<1x32xf32> to vector<128x32xf32>
    %15 = arith.addf %12, %14 : vector<128x32xf32>
    %c0_11 = arith.constant 0 : index
    %c0_12 = arith.constant 0 : index
    %16 = vector.load %arg10[%c0_11, %c0_12] : memref<2x32xf32, #tpu.memory_space<vmem>>, vector<2x32xf32>
    %c0_13 = arith.constant 0 : index
    %c0_14 = arith.constant 0 : index
    %17 = vector.load %arg6[%c0_13, %c0_14] : memref<2x128xf32, #tpu.memory_space<vmem>>, vector<2x128xf32>
    %cst_15 = arith.constant dense<0.000000e+00> : vector<2x32xf32>
    %18 = tpu.matmul %17, %15, %cst_15 {dimension_numbers = #tpu.dot_dimension_numbers<[1], [0], [0], [1], [0, 0, 1, 1], [], []>} : vector<2x128xf32>, vector<128x32xf32>, vector<2x32xf32> -> vector<2x32xf32>
    %19 = arith.addf %16, %18 : vector<2x32xf32>
    %c0_16 = arith.constant 0 : index
    %c0_17 = arith.constant 0 : index
    %20 = vector.load %arg10[%c0_16, %c0_17] : memref<2x32xf32, #tpu.memory_space<vmem>>, vector<2x32xf32>
    tpu.vector_store %arg10[%c0_16, %c0_17], %19 {strides = array<i32>} : memref<2x32xf32, #tpu.memory_space<vmem>>, vector<2x32xf32>,
    %c0_i32_18 = arith.constant 0 : i32
    %21 = arith.cmpi eq, %arg0, %c0_i32_18 : i32
    %22 = arith.extui %21 : i1 to i32
    %c0_i32_19 = arith.constant 0 : i32
    %23 = arith.cmpi ne, %22, %c0_i32_19 : i32
    scf.if %23 {
      %c0_20 = arith.constant 0 : index
      %c0_21 = arith.constant 0 : index
      %24 = vector.load %arg10[%c0_20, %c0_21] : memref<2x32xf32, #tpu.memory_space<vmem>>, vector<2x32xf32>
      %c0_22 = arith.constant 0 : index
      %c0_23 = arith.constant 0 : index
      %25 = vector.load %arg7[%c0_22, %c0_23] : memref<32x4xf32, #tpu.memory_space<vmem>>, vector<32x4xf32>
      %cst_24 = arith.constant dense<0.000000e+00> : vector<2x4xf32>
      %26 = tpu.matmul %24, %25, %cst_24 {dimension_numbers = #tpu.dot_dimension_numbers<[1], [0], [0], [1], [0, 0, 1, 1], [], []>} : vector<2x32xf32>, vector<32x4xf32>, vector<2x4xf32> -> vector<2x4xf32>
      %c0_25 = arith.constant 0 : index
      %c0_26 = arith.constant 0 : index
      %27 = vector.load %arg8[%c0_25, %c0_26] : memref<1x4xf32, #tpu.memory_space<vmem>>, vector<1x4xf32>
      %28 = vector.broadcast %27 : vector<1x4xf32> to vector<2x4xf32>
      %29 = arith.addf %26, %28 : vector<2x4xf32>
      %c0_27 = arith.constant 0 : index
      %c0_28 = arith.constant 0 : index
      %30 = vector.load %arg9[%c0_27, %c0_28] : memref<2x4xf32, #tpu.memory_space<vmem>>, vector<2x4xf32>
      tpu.vector_store %arg9[%c0_27, %c0_28], %29 {strides = array<i32>} : memref<2x4xf32, #tpu.memory_space<vmem>>, vector<2x4xf32>,
    } else {
    }
    return
  }
  func.func @transform_0(%arg0: i32) -> (i32, i32) {
    %c0_i32 = arith.constant 0 : i32
    %c0_i32_0 = arith.constant 0 : i32
    return %arg0, %c0_i32 : i32, i32
  }
  func.func @transform_1(%arg0: i32) -> (i32, i32) {
    %c0_i32 = arith.constant 0 : i32
    %c0_i32_0 = arith.constant 0 : i32
    %c0_i32_1 = arith.constant 0 : i32
    return %c0_i32, %c0_i32_0 : i32, i32
  }
  func.func @transform_2(%arg0: i32) -> (i32, i32) {
    %c0_i32 = arith.constant 0 : i32
    %c0_i32_0 = arith.constant 0 : i32
    %c0_i32_1 = arith.constant 0 : i32
    return %c0_i32, %c0_i32_0 : i32, i32
  }
  func.func @transform_3(%arg0: i32) -> (i32, i32) {
    %c0_i32 = arith.constant 0 : i32
    %c0_i32_0 = arith.constant 0 : i32
    %c0_i32_1 = arith.constant 0 : i32
    return %c0_i32, %c0_i32_0 : i32, i32
  }
  func.func @transform_4(%arg0: i32) -> (i32, i32) {
    %c0_i32 = arith.constant 0 : i32
    %c0_i32_0 = arith.constant 0 : i32
    return %arg0, %c0_i32 : i32, i32
  }
  func.func @transform_5(%arg0: i32) -> (i32, i32) {
    %c0_i32 = arith.constant 0 : i32
    %c0_i32_0 = arith.constant 0 : i32
    return %c0_i32, %arg0 : i32, i32
  }
  func.func @transform_6(%arg0: i32) -> (i32, i32) {
    %c0_i32 = arith.constant 0 : i32
    %c0_i32_0 = arith.constant 0 : i32
    %c0_i32_1 = arith.constant 0 : i32
    return %c0_i32, %c0_i32_0 : i32, i32
  }
  func.func @transform_7(%arg0: i32) -> (i32, i32) {
    %c0_i32 = arith.constant 0 : i32
    %c0_i32_0 = arith.constant 0 : i32
    %c0_i32_1 = arith.constant 0 : i32
    return %c0_i32, %c0_i32_0 : i32, i32
  }
  func.func @transform_8(%arg0: i32) -> (i32, i32) {
    %c0_i32 = arith.constant 0 : i32
    %c0_i32_0 = arith.constant 0 : i32
    %c0_i32_1 = arith.constant 0 : i32
    return %c0_i32, %c0_i32_0 : i32, i32
  }
}

</mosaic_0001>

<bundles_post_ra>
// kernel: simple_gcn_forward.2
= control target key start
LH: loop header
LB: loop body
LE: loop exit
PB: predicated region body
PF: predicated region fallthrough
CT: control target
= control target key end

     0   :  { %vm38_vm0 = vcmask 64512   ;;  %v828_v19 = vmov 0   ;;  %vm632_vm1 = vcmask 257024   ;;  %s1095_s2 = inlined_call_operand.vmem [shape: f32[8,32], index: 2, kind: input, shape index: {}]   ;;  %s1096_s1 = inlined_call_operand.vmem [shape: f32[128,8], index: 1, kind: input, shape index: {}]   ;;  %s1097_s0 = inlined_call_operand.vmem [shape: bf16[128,128], index: 0, kind: input, shape index: {}]   ;;  %s1098_s4 = inlined_call_operand.vmem [shape: f32[128,1], index: 4, kind: input, shape index: {}]   ;;  %s1099_s3 = inlined_call_operand.vmem [shape: f32[1,32], index: 3, kind: input, shape index: {}]   ;;  %s1100_s5 = inlined_call_operand.vmem [shape: bf16[128,32], index: 5, kind: output, shape index: {}]  }
   0x1   :  { %v37_v0 = vld [vmem:[%s1095_s2] sm:$0xff]  ;;  %v22_v2 = vld [vmem:[%s1096_s1 + $0x8] sm:$0xff]  ;;  %v23_v3 = vld [vmem:[%s1096_s1 + $0x10] sm:$0xff]  ;;  %819 = vset.pattern.permute.xlu1 %v828_v19  ;;  %818 = vset.pattern.permute.xlu0 %v828_v19 }
   0x2   :  { %v21_v1 = vld [vmem:[%s1096_s1] sm:$0xff]  ;;  %743 = vmatprep.subr.mxu0 %v37_v0  ;;  %v24_v4 = vld [vmem:[%s1096_s1 + $0x18] sm:$0xff]  ;;  %v26_v6 = vld [vmem:[%s1096_s1 + $0x28] sm:$0xff] }
   0x3   :  { %745 = vmatprep.mubr.msk.f32.mxu0 %vm38_vm0, %v21_v1  ;;  %744 = vmatpush3.msra.mxu0 %v37_v0  ;;  %v25_v5 = vld [vmem:[%s1096_s1 + $0x20] sm:$0xff]  ;;  %v27_v7 = vld [vmem:[%s1096_s1 + $0x30] sm:$0xff]  ;;  %v28_v8 = vld [vmem:[%s1096_s1 + $0x38] sm:$0xff] }
   0x4   :  { %746 = vmatmul.mubr.msk.f32.vlgmr.msra.gmra.mrb[0].mxu0 %vm38_vm0, %v22_v2  ;;  %v29_v9 = vld [vmem:[%s1096_s1 + $0x40] sm:$0xff]  ;;  %v30_v10 = vld [vmem:[%s1096_s1 + $0x48] sm:$0xff]  ;;  %v31_v11 = vld [vmem:[%s1096_s1 + $0x50] sm:$0xff] }
   0x5   :  { %748 = vmatprep.mubr.msk.f32.mxu0 %vm38_vm0, %v23_v3  ;;  %v32_v12 = vld [vmem:[%s1096_s1 + $0x58] sm:$0xff]  ;;  %v33_v13 = vld [vmem:[%s1096_s1 + $0x60] sm:$0xff]  ;;  %v34_v14 = vld [vmem:[%s1096_s1 + $0x68] sm:$0xff] }
   0x6   :  { %v35_v15 = vld [vmem:[%s1096_s1 + $0x70] sm:$0xff]  ;;  %v36_v16 = vld [vmem:[%s1096_s1 + $0x78] sm:$0xff]  ;;  %v820_v17 = vld [vmem:[%s1097_s0] sm:$0xff]  }
   0x7   :  { %v821_v18 = vld [vmem:[%s1097_s0 + $0x10] sm:$0xff]   ;;  %v401_v21 = vld [vmem:[%s1098_s4] sm:$0xff]  ;;  %v404_v22 = vld [vmem:[%s1098_s4 + $0x18] sm:$0xff] }
   0x8   :  { %749 = vmatmul.mubr.msk.f32.gmra.mrb[2].mxu0 %vm38_vm0, %v24_v4  ;;  %789 = vmatprep.mubr.bf16.mxu1 %v821_v18  ;;  %v403_v20 = vld [vmem:[%s1098_s4 + $0x10] sm:$0xff]  ;;  %v402_v23 = vld [vmem:[%s1098_s4 + $0x8] sm:$0xff]  ;;  %v405_v25 = vld [vmem:[%s1098_s4 + $0x20] sm:$0xff] }
   0x9   :  { %751 = vmatprep.mubr.msk.f32.mxu0 %vm38_vm0, %v25_v5  ;;  %429 = vperm.xlu1 %819, %v403_v20   ;;  %v406_v24 = vld [vmem:[%s1098_s4 + $0x28] sm:$0xff]  ;;  %v408_v26 = vld [vmem:[%s1098_s4 + $0x38] sm:$0xff]  ;;  %v407_v27 = vld [vmem:[%s1098_s4 + $0x30] sm:$0xff] }
   0xa   :  { %419 = vperm.xlu0 %818, %v401_v21   ;;  %v410_v28 = vld [vmem:[%s1098_s4 + $0x48] sm:$0xff]  ;;  %v409_v29 = vld [vmem:[%s1098_s4 + $0x40] sm:$0xff]  ;;  %v412_v30 = vld [vmem:[%s1098_s4 + $0x58] sm:$0xff] }
   0xb   :  { %v411_v31 = vld [vmem:[%s1098_s4 + $0x50] sm:$0xff]  ;;  %v414_v32 = vld [vmem:[%s1098_s4 + $0x68] sm:$0xff]  ;;  %v413_v33 = vld [vmem:[%s1098_s4 + $0x60] sm:$0xff] }
   0xc   :  { %752 = vmatmul.mubr.msk.f32.gmra.mrb[4].mxu0 %vm38_vm0, %v26_v6  ;;  %v416_v34 = vld [vmem:[%s1098_s4 + $0x78] sm:$0xff]  ;;  %v415_v35 = vld [vmem:[%s1098_s4 + $0x70] sm:$0xff]  ;;  %v822_v60 = vld [vmem:[%s1097_s0 + $0x8] sm:$0xff]  }
   0xd   :  { %754 = vmatprep.mubr.msk.f32.mxu0 %vm38_vm0, %v27_v7  ;;  %434 = vperm.xlu1 %819, %v404_v22   ;;  %v823_v61 = vld [vmem:[%s1097_s0 + $0x18] sm:$0xff]   ;;  %v824_v62 = vld [vmem:[%s1097_s0 + $0x20] sm:$0xff]   ;;  %v825_v63 = vld [vmem:[%s1097_s0 + $0x28] sm:$0xff]  }
   0xe   :  { %424 = vperm.xlu0 %818, %v402_v23   ;;  %v826_v0 = vld [vmem:[%s1097_s0 + $0x30] sm:$0xff]   ;;  %v827_v1 = vld [vmem:[%s1097_s0 + $0x38] sm:$0xff]  }
  0x10   :  { %755 = vmatmul.mubr.msk.f32.gmra.mrb[6].mxu0 %vm38_vm0, %v28_v8 }
  0x11   :  { %757 = vmatprep.mubr.msk.f32.mxu0 %vm38_vm0, %v29_v9  ;;  %444 = vperm.xlu1 %819, %v406_v24  }
  0x12   :  { %439 = vperm.xlu0 %818, %v405_v25  }
  0x14   :  { %758 = vmatmul.mubr.msk.f32.gmra.mrb[8].mxu0 %vm38_vm0, %v30_v10 }
  0x15   :  { %760 = vmatprep.mubr.msk.f32.mxu0 %vm38_vm0, %v31_v11  ;;  %454 = vperm.xlu1 %819, %v408_v26  }
  0x16   :  { %449 = vperm.xlu0 %818, %v407_v27  }
  0x18   :  { %761 = vmatmul.mubr.msk.f32.gmra.mrb[10].mxu0 %vm38_vm0, %v32_v12 }
  0x19   :  { %763 = vmatprep.mubr.msk.f32.mxu0 %vm38_vm0, %v33_v13  ;;  %464 = vperm.xlu1 %819, %v410_v28   ;;  %v1005_v13 = vld [vmem:[%s1099_s3] ss:$0 sm:$0xff] }
  0x1a   :  { %459 = vperm.xlu0 %818, %v409_v29  }
  0x1c   :  { %764 = vmatmul.mubr.msk.f32.gmra.mrb[12].mxu0 %vm38_vm0, %v34_v14 }
  0x1d   :  { %766 = vmatprep.mubr.msk.f32.mxu0 %vm38_vm0, %v35_v15  ;;  %474 = vperm.xlu1 %819, %v412_v30  }
  0x1e   :  { %469 = vperm.xlu0 %818, %v411_v31  }
  0x20   :  { %767 = vmatmul.mubr.msk.f32.gmra.mrb[14].mxu0 %vm38_vm0, %v36_v16 }
  0x21   :  { %785 = vmatprep.mubr.bf16.mxu0 %v820_v17  ;;  %484 = vperm.xlu1 %819, %v414_v32  }
  0x22   :  { %479 = vperm.xlu0 %818, %v413_v33  }
  0x25   :  { %494 = vperm.xlu1 %819, %v416_v34  }
  0x26   :  { %489 = vperm.xlu0 %818, %v415_v35  }
  0x88   :  { %v430_v3 = vpop.permute.xlu1 %429 }
  0x89   :  { %v420_v2 = vpop.permute.xlu0 %419 }
  0x8c   :  { %v435_v5 = vpop.permute.xlu1 %434 }
  0x8d   :  { %v425_v4 = vpop.permute.xlu0 %424 }
  0x90   :  { %v445_v7 = vpop.permute.xlu1 %444 }
  0x91   :  { %v440_v6 = vpop.permute.xlu0 %439 }
  0x94   :  { %v455_v9 = vpop.permute.xlu1 %454 }
  0x95   :  { %v450_v8 = vpop.permute.xlu0 %449 }
  0x98   :  { %v1000_v11 = vpop.permute.xlu1 %464 }
  0x99   :  { %v998_v10 = vpop.permute.xlu0 %459 }
  0x9d   :  { %v1009_v29 = vpop.permute.xlu0 %469 }
  0xd7   :  { %v747_v36 = vpop.f32.mrb[0].mxu0 }
  0xd8   :  { %v153_v37 = vpop.f32.mrb[1].mxu0 }
  0xd9   :  { %v248_v38 = vpack.c.bf16 %v747_v36, %v153_v37 }
  0xdb   :  { %v750_v39 = vpop.f32.mrb[2].mxu0  ;;  %769 = vmatprep.subr.bf16.mxu0 %v248_v38  ;;  %801 = vmatprep.subr.bf16.mxu1 %v248_v38 }
  0xdc   :  { %v163_v40 = vpop.f32.mrb[3].mxu0  ;;  %770 = vmatpush3.bf16.msra.mxu0 %v248_v38  ;;  %809 = vmatpush3.bf16.msra.mxu1 %v248_v38  ;;  %v475_v38 = vpop.permute.xlu1 %474 }
  0xdd   :  { %v249_v41 = vpack.c.bf16 %v750_v39, %v163_v40 }
  0xdf   :  { %v753_v42 = vpop.f32.mrb[4].mxu0  ;;  %771 = vmatprep.subr.bf16.mxu0 %v249_v41  ;;  %802 = vmatprep.subr.bf16.mxu1 %v249_v41 }
  0xe0   :  { %v173_v43 = vpop.f32.mrb[5].mxu0  ;;  %772 = vmatpush3.bf16.msra.mxu0 %v249_v41  ;;  %810 = vmatpush3.bf16.msra.mxu1 %v249_v41 }
  0xe1   :  { %v250_v44 = vpack.c.bf16 %v753_v42, %v173_v43 }
  0xe3   :  { %v756_v45 = vpop.f32.mrb[6].mxu0  ;;  %773 = vmatprep.subr.bf16.mxu0 %v250_v44  ;;  %803 = vmatprep.subr.bf16.mxu1 %v250_v44 }
  0xe4   :  { %v183_v46 = vpop.f32.mrb[7].mxu0  ;;  %774 = vmatpush3.bf16.msra.mxu0 %v250_v44  ;;  %811 = vmatpush3.bf16.msra.mxu1 %v250_v44 }
  0xe5   :  { %v251_v47 = vpack.c.bf16 %v756_v45, %v183_v46 }
  0xe7   :  { %v759_v48 = vpop.f32.mrb[8].mxu0  ;;  %775 = vmatprep.subr.bf16.mxu0 %v251_v47  ;;  %804 = vmatprep.subr.bf16.mxu1 %v251_v47 }
  0xe8   :  { %v193_v49 = vpop.f32.mrb[9].mxu0  ;;  %776 = vmatpush3.bf16.msra.mxu0 %v251_v47  ;;  %812 = vmatpush3.bf16.msra.mxu1 %v251_v47 }
  0xe9   :  { %v252_v50 = vpack.c.bf16 %v759_v48, %v193_v49 }
  0xeb   :  { %v762_v51 = vpop.f32.mrb[10].mxu0  ;;  %777 = vmatprep.subr.bf16.mxu0 %v252_v50  ;;  %805 = vmatprep.subr.bf16.mxu1 %v252_v50 }
  0xec   :  { %v203_v52 = vpop.f32.mrb[11].mxu0  ;;  %778 = vmatpush3.bf16.msra.mxu0 %v252_v50  ;;  %813 = vmatpush3.bf16.msra.mxu1 %v252_v50 }
  0xed   :  { %v253_v53 = vpack.c.bf16 %v762_v51, %v203_v52 }
  0xef   :  { %v765_v54 = vpop.f32.mrb[12].mxu0  ;;  %779 = vmatprep.subr.bf16.mxu0 %v253_v53  ;;  %806 = vmatprep.subr.bf16.mxu1 %v253_v53 }
  0xf0   :  { %v213_v55 = vpop.f32.mrb[13].mxu0  ;;  %780 = vmatpush3.bf16.msra.mxu0 %v253_v53  ;;  %814 = vmatpush3.bf16.msra.mxu1 %v253_v53 }
  0xf1   :  { %v254_v56 = vpack.c.bf16 %v765_v54, %v213_v55 }
  0xf3   :  { %v768_v57 = vpop.f32.mrb[14].mxu0  ;;  %781 = vmatprep.subr.bf16.mxu0 %v254_v56  ;;  %807 = vmatprep.subr.bf16.mxu1 %v254_v56 }
  0xf4   :  { %v223_v58 = vpop.f32.mrb[15].mxu0  ;;  %782 = vmatpush3.bf16.msra.mxu0 %v254_v56  ;;  %815 = vmatpush3.bf16.msra.mxu1 %v254_v56 }
  0xf5   :  { %v255_v59 = vpack.c.bf16 %v768_v57, %v223_v58  ;;  %v480_v57 = vpop.permute.xlu0 %479 }
  0xf7   :  { %783 = vmatprep.subr.bf16.mxu0 %v255_v59  ;;  %808 = vmatprep.subr.bf16.mxu1 %v255_v59 }
  0xf8   :  { %784 = vmatpush3.bf16.msra.mxu0 %v255_v59  ;;  %816 = vmatpush3.bf16.msra.mxu1 %v255_v59 }
  0xfb   :  { %786 = vmatmul.mubr.bf16.vlgmr.msra.gmra.mrb[16].mxu0 %v822_v60  ;;  %790 = vmatmul.mubr.bf16.vlgmr.msra.gmra.mrb[0].mxu1 %v823_v61 }
  0xfc   :  { %793 = vmatprep.mubr.bf16.mxu1 %v824_v62 }
 0x103   :  { %794 = vmatmul.mubr.bf16.gmra.mrb[4].mxu1 %v825_v63 }
 0x104   :  { %797 = vmatprep.mubr.bf16.mxu1 %v826_v0 }
 0x10b   :  { %798 = vmatmul.mubr.bf16.gmra.mrb[8].mxu1 %v827_v1 }
 0x1ce   :  { %v787_v12 = vpop.f32.mrb[16].mxu0  ;;  %v791_v14 = vpop.f32.mrb[0].mxu1 }
 0x1cf   :  { %v499_v15 = vmul.f32 %v787_v12, %v430_v3  ;;  %v503_v16 = vmul.f32 %v791_v14, %v450_v8  ;;  %v338_v17 = vpop.f32.mrb[17].mxu0  ;;  %v354_v18 = vpop.f32.mrb[1].mxu1 }
 0x1d0   :  { %v497_v19 = vmul.f32 %v420_v2, %v338_v17  ;;  %v501_v20 = vmul.f32 %v440_v6, %v354_v18  ;;  %v788_v21 = vpop.f32.mrb[18].mxu0  ;;  %v792_v22 = vpop.f32.mrb[2].mxu1 }
 0x1d1   :  { %v522_v23 = vadd.f32 %v1005_v13, %v499_v15  ;;  %v526_v24 = vadd.f32 %v1005_v13, %v503_v16  ;;  %v500_v25 = vmul.f32 %v788_v21, %v435_v5  ;;  %v504_v26 = vmul.f32 %v792_v22, %v455_v9  ;;  %v341_v27 = vpop.f32.mrb[19].mxu0  ;;  %v357_v28 = vpop.f32.mrb[3].mxu1 }
 0x1d2   :  { %v520_v30 = vadd.f32 %v1005_v13, %v497_v19  ;;  %v524_v31 = vadd.f32 %v1005_v13, %v501_v20  ;;  %v498_v32 = vmul.f32 %v425_v4, %v341_v27  ;;  %v502_v33 = vmul.f32 %v445_v7, %v357_v28  ;;  %v490_v18 = vpop.permute.xlu0 %489 }
 0x1d3   :  { %v538_v34 = vmax.f32 %v522_v23, 0.0  ;;  %v542_v35 = vmax.f32 %v526_v24, 0.0  ;;  %v523_v36 = vadd.f32 %v1005_v13, %v500_v25  ;;  %v527_v37 = vadd.f32 %v1005_v13, %v504_v26 }
 0x1d4   :  { %v536_v39 = vmax.f32 %v520_v30, 0.0  ;;  %v540_v40 = vmax.f32 %v524_v31, 0.0  ;;  %v521_v41 = vadd.f32 %v1005_v13, %v498_v32  ;;  %v525_v42 = vadd.f32 %v1005_v13, %v502_v33 }
 0x1d5   :  { %v554_v43 = vmul.f32 %v538_v34, %v430_v3  ;;  %v558_v44 = vmul.f32 %v542_v35, %v450_v8  ;;  %v539_v45 = vmax.f32 %v523_v36, 0.0  ;;  %v543_v46 = vmax.f32 %v527_v37, 0.0 }
 0x1d6   :  { %v552_v47 = vmul.f32 %v536_v39, %v420_v2  ;;  %v556_v48 = vmul.f32 %v540_v40, %v440_v6  ;;  %v537_v49 = vmax.f32 %v521_v41, 0.0  ;;  %v541_v50 = vmax.f32 %v525_v42, 0.0  ;;  %v795_v51 = vpop.f32.mrb[4].mxu1 }
 0x1d7   :  { %v696_v52 = vpack.c.bf16 %v554_v43, %v554_v43  ;;  %v700_v53 = vpack.c.bf16 %v558_v44, %v558_v44  ;;  %v555_v54 = vmul.f32 %v539_v45, %v435_v5  ;;  %v559_v55 = vmul.f32 %v543_v46, %v455_v9  ;;  %v370_v56 = vpop.f32.mrb[5].mxu1 }
 0x1d8   :  { %v694_v58 = vpack.c.bf16 %v552_v47, %v552_v47  ;;  %v698_v59 = vpack.c.bf16 %v556_v48, %v556_v48  ;;  %v553_v60 = vmul.f32 %v537_v49, %v425_v4  ;;  %v557_v61 = vmul.f32 %v541_v50, %v445_v7  ;;  %v796_v62 = vpop.f32.mrb[6].mxu1  ;;  %v485_v4 = vpop.permute.xlu1 %484 }
 0x1d9   :  { %635 = vst.msk [vmem:[%s1100_s5 + $0x8] sm:$0xf] %vm632_vm1, %v696_v52  ;;  %639 = vst.msk [vmem:[%s1100_s5 + $0x18] sm:$0xf] %vm632_vm1, %v700_v53  ;;  %v697_v63 = vpack.c.bf16 %v555_v54, %v555_v54  ;;  %v701_v0 = vpack.c.bf16 %v559_v55, %v559_v55  ;;  %v507_v1 = vmul.f32 %v795_v51, %v1009_v29  ;;  %v373_v3 = vpop.f32.mrb[7].mxu1 }
 0x1da   :  { %v505_v2 = vmul.f32 %v998_v10, %v370_v56  ;;  %633 = vst.msk [vmem:[%s1100_s5] sm:$0xf] %vm632_vm1, %v694_v58  ;;  %637 = vst.msk [vmem:[%s1100_s5 + $0x10] sm:$0xf] %vm632_vm1, %v698_v59  ;;  %v695_v5 = vpack.c.bf16 %v553_v60, %v553_v60  ;;  %v699_v6 = vpack.c.bf16 %v557_v61, %v557_v61 }
 0x1db   :  { %v508_v7 = vmul.f32 %v796_v62, %v475_v38  ;;  %v506_v8 = vmul.f32 %v1000_v11, %v373_v3  ;;  %636 = vst.msk [vmem:[%s1100_s5 + $0xc] sm:$0xf] %vm632_vm1, %v697_v63  ;;  %640 = vst.msk [vmem:[%s1100_s5 + $0x1c] sm:$0xf] %vm632_vm1, %v701_v0  ;;  %v530_v9 = vadd.f32 %v1005_v13, %v507_v1 }
 0x1dc   :  { %v528_v12 = vadd.f32 %v1005_v13, %v505_v2  ;;  %634 = vst.msk [vmem:[%s1100_s5 + $0x4] sm:$0xf] %vm632_vm1, %v695_v5  ;;  %638 = vst.msk [vmem:[%s1100_s5 + $0x14] sm:$0xf] %vm632_vm1, %v699_v6  ;;  %v495_v26 = vpop.permute.xlu1 %494 }
 0x1dd   :  { %v531_v14 = vadd.f32 %v1005_v13, %v508_v7  ;;  %v529_v15 = vadd.f32 %v1005_v13, %v506_v8  ;;  %v546_v16 = vmax.f32 %v530_v9, 0.0 }
 0x1de   :  { %v544_v17 = vmax.f32 %v528_v12, 0.0  ;;  %v799_v21 = vpop.f32.mrb[8].mxu1 }
 0x1df   :  { %v547_v19 = vmax.f32 %v531_v14, 0.0  ;;  %v545_v20 = vmax.f32 %v529_v15, 0.0  ;;  %v562_v22 = vmul.f32 %v546_v16, %v1009_v29  ;;  %v511_v24 = vmul.f32 %v799_v21, %v490_v18  ;;  %v386_v25 = vpop.f32.mrb[9].mxu1 }
 0x1e0   :  { %v560_v23 = vmul.f32 %v544_v17, %v998_v10  ;;  %v509_v30 = vmul.f32 %v480_v57, %v386_v25  ;;  %v800_v31 = vpop.f32.mrb[10].mxu1 }
 0x1e1   :  { %v563_v27 = vmul.f32 %v547_v19, %v475_v38  ;;  %v561_v28 = vmul.f32 %v545_v20, %v1000_v11  ;;  %v704_v32 = vpack.c.bf16 %v562_v22, %v562_v22  ;;  %v534_v34 = vadd.f32 %v1005_v13, %v511_v24  ;;  %v389_v36 = vpop.f32.mrb[11].mxu1 }
 0x1e2   :  { %v702_v33 = vpack.c.bf16 %v560_v23, %v560_v23  ;;  %v512_v35 = vmul.f32 %v800_v31, %v495_v26  ;;  %v532_v29 = vadd.f32 %v1005_v13, %v509_v30  ;;  %v510_v40 = vmul.f32 %v485_v4, %v389_v36 }
 0x1e3   :  { %v705_v37 = vpack.c.bf16 %v563_v27, %v563_v27  ;;  %v703_v39 = vpack.c.bf16 %v561_v28, %v561_v28  ;;  %643 = vst.msk [vmem:[%s1100_s5 + $0x28] sm:$0xf] %vm632_vm1, %v704_v32  ;;  %v550_v10 = vmax.f32 %v534_v34, 0.0 }
 0x1e4   :  { %641 = vst.msk [vmem:[%s1100_s5 + $0x20] sm:$0xf] %vm632_vm1, %v702_v33  ;;  %v535_v11 = vadd.f32 %v1005_v13, %v512_v35  ;;  %v548_v38 = vmax.f32 %v532_v29, 0.0  ;;  %v533_v41 = vadd.f32 %v1005_v13, %v510_v40 }
 0x1e5   :  { %644 = vst.msk [vmem:[%s1100_s5 + $0x2c] sm:$0xf] %vm632_vm1, %v705_v37  ;;  %642 = vst.msk [vmem:[%s1100_s5 + $0x24] sm:$0xf] %vm632_vm1, %v703_v39  ;;  %v566_v42 = vmul.f32 %v550_v10, %v490_v18 }
 0x1e6   :  { %v551_v43 = vmax.f32 %v535_v11, 0.0  ;;  %v564_v44 = vmul.f32 %v548_v38, %v480_v57  ;;  %v549_v45 = vmax.f32 %v533_v41, 0.0 }
 0x1e7   :  { %v708_v46 = vpack.c.bf16 %v566_v42, %v566_v42 }
 0x1e8   :  { %v567_v47 = vmul.f32 %v551_v43, %v495_v26  ;;  %v706_v48 = vpack.c.bf16 %v564_v44, %v564_v44  ;;  %v565_v49 = vmul.f32 %v549_v45, %v485_v4 }
 0x1e9   :  { %647 = vst.msk [vmem:[%s1100_s5 + $0x38] sm:$0xf] %vm632_vm1, %v708_v46 }
 0x1ea   :  { %v709_v50 = vpack.c.bf16 %v567_v47, %v567_v47  ;;  %645 = vst.msk [vmem:[%s1100_s5 + $0x30] sm:$0xf] %vm632_vm1, %v706_v48  ;;  %v707_v13 = vpack.c.bf16 %v565_v49, %v565_v49 }
 0x1ec   :  { %648 = vst.msk [vmem:[%s1100_s5 + $0x3c] sm:$0xf] %vm632_vm1, %v709_v50  ;;  %646 = vst.msk [vmem:[%s1100_s5 + $0x34] sm:$0xf] %vm632_vm1, %v707_v13 }

// kernel: simple_gcn_forward.3
= control target key start
LH: loop header
LB: loop body
LE: loop exit
PB: predicated region body
PF: predicated region fallthrough
CT: control target
= control target key end

     0   :  { %vm99_vm0 = vcmask 261120   ;;  %s1189_s0 = inlined_call_operand.vmem [shape: bf16[128,128], index: 0, kind: input, shape index: {}]   ;;  %s1190_s1 = inlined_call_operand.vmem [shape: bf16[128,32], index: 1, kind: input, shape index: {}]   ;;  %s1191_s2 = inlined_call_operand.vmem [shape: f32[32,32], index: 2, kind: input, shape index: {}]   ;;  %s1192_s3 = inlined_call_operand.vmem [shape: f32[1,32], index: 3, kind: input, shape index: {}]   ;;  %s1193_s4 = inlined_call_operand.vmem [shape: f32[128,1], index: 4, kind: input, shape index: {}]   ;;  %s1194_s5 = inlined_call_operand.vmem [shape: f32[2,128], index: 5, kind: input, shape index: {}]   ;;  %s1195_s6 = inlined_call_operand.vmem [shape: f32[32,4], index: 6, kind: input, shape index: {}]   ;;  %s1196_s7 = inlined_call_operand.vmem [shape: f32[1,4], index: 7, kind: input, shape index: {}]   ;;  %s1197_s8 = inlined_call_operand.hbm [shape: f32[2,4], index: 8, kind: output, shape index: {}]  }
   0x1   :  { %v53_v0 = vld [vmem:[%s1191_s2] sm:$0xff]  ;;  %v54_v1 = vld [vmem:[%s1191_s2 + $0x8] sm:$0xff]  ;;  %v55_v2 = vld [vmem:[%s1191_s2 + $0x10] sm:$0xff] }
   0x2   :  { %v57_v3 = vpack.c.bf16 %v54_v1, %v53_v0  ;;  %v56_v4 = vld [vmem:[%s1191_s2 + $0x18] sm:$0xff]  ;;  %v914_v6 = vld [vmem:[%s1190_s1] sm:$0xff]   ;;  %v915_v7 = vld [vmem:[%s1190_s1 + $0x8] sm:$0xff]  }
   0x3   :  { %v58_v5 = vpack.c.bf16 %v56_v4, %v55_v2  ;;  %783 = vmatprep.mubr.msk.bf16.mxu0 %vm99_vm0, %v914_v6  ;;  %v916_v8 = vld [vmem:[%s1190_s1 + $0x10] sm:$0xff]  }
   0x4   :  { %779 = vmatprep.subr.bf16.mxu0 %v57_v3 }
   0x5   :  { %780 = vmatpush3.bf16.msra.mxu0 %v57_v3 }
   0x6   :  { %781 = vmatprep.subr.bf16.mxu0 %v58_v5 }
   0x9   :  { %782 = vmatpush3.bf16.msra.mxu0 %v58_v5 }
   0xc   :  { %784 = vmatmul.mubr.msk.bf16.vlgmr.msra.gmra.mrb[0].mxu0 %vm99_vm0, %v915_v7 }
   0xd   :  { %787 = vmatprep.mubr.msk.bf16.mxu0 %vm99_vm0, %v916_v8 }
   0xe   :  { %13 = vsyncpa [#allocation4], 0  ;;  %v917_v9 = vld [vmem:[%s1190_s1 + $0x18] sm:$0xff]   ;;  %v918_v10 = vld [vmem:[%s1190_s1 + $0x20] sm:$0xff]   ;;  %v954_v17 = vmov 0   ;;  %v955_v63 = vmov 0.0|0.0  }
   0xf   :  { %v919_v11 = vld [vmem:[%s1190_s1 + $0x28] sm:$0xff]   ;;  %v920_v12 = vld [vmem:[%s1190_s1 + $0x30] sm:$0xff]   ;;  %v921_v13 = vld [vmem:[%s1190_s1 + $0x38] sm:$0xff]   ;;  %912 = vset.pattern.permute.xlu0 %v954_v17  ;;  %913 = vset.pattern.permute.xlu1 %v954_v17  ;;  %vm35_vm1 = vcmask 254976   ;;  %v956_v0 = vmov 0.0   ;;  %vm957_vm2 = vmmov 0  }
  0x10   :  { %v922_v14 = vld [vmem:[%s1189_s0] sm:$0xff]   ;;  %v392_v16 = vld [vmem:[%s1193_s4 + $0x10] sm:$0xff]  ;;  %v391_v18 = vld [vmem:[%s1193_s4 + $0x8] sm:$0xff]  ;;  %877 = vmatprep.subr.bf16.mxu0 %v955_v63  ;;  %36 = vst.msk [vmem:[#allocation2] sm:$0x3] %vm35_vm1, %v956_v0  ;;  %vm688_vm3 = vcmask 25600  }
  0x11   :  { %815 = vmatprep.mubr.bf16.mxu1 %v922_v14  ;;  %v390_v15 = vld [vmem:[%s1193_s4] sm:$0xff]  ;;  %418 = vperm.xlu1 %913, %v392_v16   ;;  %v393_v19 = vld [vmem:[%s1193_s4 + $0x18] sm:$0xff]  ;;  %v395_v21 = vld [vmem:[%s1193_s4 + $0x28] sm:$0xff] }
  0x12   :  { %408 = vperm.xlu0 %912, %v390_v15   ;;  %v394_v20 = vld [vmem:[%s1193_s4 + $0x20] sm:$0xff]  ;;  %v396_v22 = vld [vmem:[%s1193_s4 + $0x30] sm:$0xff]  ;;  %v397_v23 = vld [vmem:[%s1193_s4 + $0x38] sm:$0xff] }
  0x13   :  { %v398_v24 = vld [vmem:[%s1193_s4 + $0x40] sm:$0xff]  ;;  %v399_v25 = vld [vmem:[%s1193_s4 + $0x48] sm:$0xff]  ;;  %v400_v26 = vld [vmem:[%s1193_s4 + $0x50] sm:$0xff] }
  0x14   :  { %788 = vmatmul.mubr.msk.bf16.gmra.mrb[4].mxu0 %vm99_vm0, %v917_v9  ;;  %v401_v27 = vld [vmem:[%s1193_s4 + $0x58] sm:$0xff]  ;;  %v402_v28 = vld [vmem:[%s1193_s4 + $0x60] sm:$0xff]  ;;  %v403_v29 = vld [vmem:[%s1193_s4 + $0x68] sm:$0xff] }
  0x15   :  { %791 = vmatprep.mubr.msk.bf16.mxu0 %vm99_vm0, %v918_v10  ;;  %423 = vperm.xlu1 %913, %v393_v19   ;;  %v404_v30 = vld [vmem:[%s1193_s4 + $0x70] sm:$0xff]  ;;  %v405_v31 = vld [vmem:[%s1193_s4 + $0x78] sm:$0xff]  ;;  %v923_v56 = vld [vmem:[%s1189_s0 + $0x8] sm:$0xff]   ;;  %s958_s4 = smov [#allocation3]  }
  0x16   :  { %413 = vperm.xlu0 %912, %v391_v18   ;;  %v924_v57 = vld [vmem:[%s1189_s0 + $0x10] sm:$0xff]   ;;  %v925_v58 = vld [vmem:[%s1189_s0 + $0x18] sm:$0xff]   ;;  %v926_v59 = vld [vmem:[%s1189_s0 + $0x20] sm:$0xff]  }
  0x17   :  { %v927_v60 = vld [vmem:[%s1189_s0 + $0x28] sm:$0xff]   ;;  %v928_v61 = vld [vmem:[%s1189_s0 + $0x30] sm:$0xff]   ;;  %v929_v62 = vld [vmem:[%s1189_s0 + $0x38] sm:$0xff]  }
  0x19   :  { %433 = vperm.xlu1 %913, %v395_v21  }
  0x1a   :  { %428 = vperm.xlu0 %912, %v394_v20  }
  0x1c   :  { %792 = vmatmul.mubr.msk.bf16.gmra.mrb[8].mxu0 %vm99_vm0, %v919_v11 }
  0x1d   :  { %795 = vmatprep.mubr.msk.bf16.mxu0 %vm99_vm0, %v920_v12  ;;  %443 = vperm.xlu1 %913, %v397_v23   ;;  %v1128_v12 = vld [vmem:[%s1192_s3] ss:$0 sm:$0xff] }
  0x1e   :  { %438 = vperm.xlu0 %912, %v396_v22  }
  0x21   :  { %453 = vperm.xlu1 %913, %v399_v25  }
  0x22   :  { %448 = vperm.xlu0 %912, %v398_v24  }
  0x24   :  { %796 = vmatmul.mubr.msk.bf16.gmra.mrb[12].mxu0 %vm99_vm0, %v921_v13 }
  0x25   :  { %463 = vperm.xlu1 %913, %v401_v27   ;;  %863 = vmatprep.mubr.msk.f32.mxu0 %vm957_vm2, %v956_v0 }
  0x26   :  { %458 = vperm.xlu0 %912, %v400_v26  }
  0x29   :  { %473 = vperm.xlu1 %913, %v403_v29  }
  0x2a   :  { %468 = vperm.xlu0 %912, %v402_v28  }
  0x2d   :  { %483 = vperm.xlu1 %913, %v405_v31  }
  0x2e   :  { %478 = vperm.xlu0 %912, %v404_v30  }
  0x90   :  { %v419_v2 = vpop.permute.xlu1 %418 }
  0x91   :  { %v409_v1 = vpop.permute.xlu0 %408 }
  0x94   :  { %v424_v4 = vpop.permute.xlu1 %423 }
  0x95   :  { %v414_v3 = vpop.permute.xlu0 %413 }
  0x98   :  { %v434_v6 = vpop.permute.xlu1 %433 }
  0x99   :  { %v429_v5 = vpop.permute.xlu0 %428 }
  0x9c   :  { %v444_v11 = vpop.permute.xlu1 %443 }
  0x9d   :  { %v439_v7 = vpop.permute.xlu0 %438 }
  0xa0   :  { %v454_v24 = vpop.permute.xlu1 %453 }
  0xa1   :  { %v449_v20 = vpop.permute.xlu0 %448 }
  0xdf   :  { %v785_v32 = vpop.f32.mrb[0].mxu0 }
  0xe0   :  { %v158_v33 = vpop.f32.mrb[1].mxu0 }
  0xe1   :  { %v786_v34 = vpop.f32.mrb[2].mxu0 }
  0xe2   :  { %v238_v35 = vpack.c.bf16 %v786_v34, %v785_v32  ;;  %v161_v36 = vpop.f32.mrb[3].mxu0 }
  0xe3   :  { %v237_v37 = vpack.c.bf16 %v161_v36, %v158_v33  ;;  %v459_v33 = vpop.permute.xlu0 %458 }
  0xe5   :  { %799 = vmatprep.subr.bf16.mxu1 %v237_v37 }
  0xe6   :  { %800 = vmatpush3.bf16.msra.mxu1 %v237_v37  ;;  %v464_v37 = vpop.permute.xlu1 %463 }
  0xe7   :  { %v789_v38 = vpop.f32.mrb[4].mxu0  ;;  %801 = vmatprep.subr.bf16.mxu1 %v238_v35 }
  0xe8   :  { %v174_v39 = vpop.f32.mrb[5].mxu0 }
  0xe9   :  { %v790_v40 = vpop.f32.mrb[6].mxu0 }
  0xea   :  { %v240_v41 = vpack.c.bf16 %v790_v40, %v789_v38  ;;  %v177_v42 = vpop.f32.mrb[7].mxu0  ;;  %802 = vmatpush3.bf16.msra.mxu1 %v238_v35 }
  0xeb   :  { %v239_v43 = vpack.c.bf16 %v177_v42, %v174_v39 }
  0xed   :  { %803 = vmatprep.subr.bf16.mxu1 %v239_v43 }
  0xee   :  { %804 = vmatpush3.bf16.msra.mxu1 %v239_v43 }
  0xef   :  { %v793_v44 = vpop.f32.mrb[8].mxu0  ;;  %805 = vmatprep.subr.bf16.mxu1 %v240_v41 }
  0xf0   :  { %v190_v45 = vpop.f32.mrb[9].mxu0 }
  0xf1   :  { %v794_v46 = vpop.f32.mrb[10].mxu0 }
  0xf2   :  { %v242_v47 = vpack.c.bf16 %v794_v46, %v793_v44  ;;  %v193_v48 = vpop.f32.mrb[11].mxu0  ;;  %806 = vmatpush3.bf16.msra.mxu1 %v240_v41 }
  0xf3   :  { %v241_v49 = vpack.c.bf16 %v193_v48, %v190_v45  ;;  %v469_v45 = vpop.permute.xlu0 %468 }
  0xf5   :  { %807 = vmatprep.subr.bf16.mxu1 %v241_v49 }
  0xf6   :  { %808 = vmatpush3.bf16.msra.mxu1 %v241_v49 }
  0xf7   :  { %v797_v50 = vpop.f32.mrb[12].mxu0  ;;  %809 = vmatprep.subr.bf16.mxu1 %v242_v47 }
  0xf8   :  { %v206_v51 = vpop.f32.mrb[13].mxu0 }
  0xf9   :  { %v798_v52 = vpop.f32.mrb[14].mxu0 }
  0xfa   :  { %v244_v53 = vpack.c.bf16 %v798_v52, %v797_v50  ;;  %v209_v54 = vpop.f32.mrb[15].mxu0  ;;  %810 = vmatpush3.bf16.msra.mxu1 %v242_v47  ;;  %v474_v50 = vpop.permute.xlu1 %473 }
  0xfb   :  { %v243_v55 = vpack.c.bf16 %v209_v54, %v206_v51 }
  0xfd   :  { %811 = vmatprep.subr.bf16.mxu1 %v243_v55 }
  0xfe   :  { %812 = vmatpush3.bf16.msra.mxu1 %v243_v55 }
  0xff   :  { %813 = vmatprep.subr.bf16.mxu1 %v244_v53 }
 0x102   :  { %814 = vmatpush3.bf16.msra.mxu1 %v244_v53 }
 0x105   :  { %816 = vmatmul.mubr.bf16.vlgmr.msra.gmra.mrb[0].mxu1 %v923_v56 }
 0x106   :  { %819 = vmatprep.mubr.bf16.mxu1 %v924_v57  ;;  %v479_v57 = vpop.permute.xlu0 %478 }
 0x10d   :  { %820 = vmatmul.mubr.bf16.gmra.mrb[4].mxu1 %v925_v58 }
 0x10e   :  { %823 = vmatprep.mubr.bf16.mxu1 %v926_v59 }
 0x115   :  { %824 = vmatmul.mubr.bf16.gmra.mrb[8].mxu1 %v927_v60 }
 0x116   :  { %827 = vmatprep.mubr.bf16.mxu1 %v928_v61 }
 0x11d   :  { %828 = vmatmul.mubr.bf16.gmra.mrb[12].mxu1 %v929_v62  ;;  %v484_v62 = vpop.permute.xlu1 %483 }
 0x1d8   :  { %v817_v8 = vpop.f32.mrb[0].mxu1 }
 0x1d9   :  { %v488_v9 = vmul.f32 %v817_v8, %v419_v2  ;;  %v327_v10 = vpop.f32.mrb[1].mxu1 }
 0x1da   :  { %v486_v13 = vmul.f32 %v409_v1, %v327_v10  ;;  %v818_v14 = vpop.f32.mrb[2].mxu1 }
 0x1db   :  { %v489_v15 = vmul.f32 %v818_v14, %v424_v4  ;;  %v330_v16 = vpop.f32.mrb[3].mxu1  ;;  %v511_v18 = vadd.f32 %v1128_v12, %v488_v9  ;;  %v605_v14 = vld [vmem:[%s1195_s6 + $0x8] sm:$0xff] }
 0x1dc   :  { %v487_v17 = vmul.f32 %v414_v3, %v330_v16  ;;  %v509_v21 = vadd.f32 %v1128_v12, %v486_v13  ;;  %v526_v13 = vld [vmem:[%s1194_s5] sm:$0x3]  ;;  %v606_v16 = vld [vmem:[%s1195_s6 + $0x10] sm:$0xff] }
 0x1dd   :  { %v512_v19 = vadd.f32 %v1128_v12, %v489_v15 }
 0x1de   :  { %v510_v22 = vadd.f32 %v1128_v12, %v487_v17  ;;  %v607_v17 = vld [vmem:[%s1195_s6 + $0x18] sm:$0xff] }
 0x1df   :  { %v881_v23 = vpack.c.bf16 %v512_v19, %v511_v18  ;;  %v905_v18 = vpack.c.bf16 %v607_v17, %v606_v16 }
 0x1e0   :  { %v878_v25 = vpack.c.bf16 %v510_v22, %v509_v21  ;;  %v821_v26 = vpop.f32.mrb[4].mxu1 }
 0x1e1   :  { %v492_v27 = vmul.f32 %v821_v26, %v439_v7  ;;  %v343_v28 = vpop.f32.mrb[5].mxu1 }
 0x1e2   :  { %v490_v29 = vmul.f32 %v429_v5, %v343_v28  ;;  %v822_v30 = vpop.f32.mrb[6].mxu1  ;;  %879 = vmatpush3.bf16.msra.mxu0 %v878_v25 }
 0x1e3   :  { %v493_v31 = vmul.f32 %v822_v30, %v444_v11  ;;  %v346_v32 = vpop.f32.mrb[7].mxu1  ;;  %880 = vmatprep.subr.bf16.mxu0 %v955_v63  ;;  %v515_v35 = vadd.f32 %v1128_v12, %v492_v27 }
 0x1e4   :  { %v491_v34 = vmul.f32 %v434_v6, %v346_v32  ;;  %v513_v38 = vadd.f32 %v1128_v12, %v490_v29 }
 0x1e5   :  { %v516_v36 = vadd.f32 %v1128_v12, %v493_v31 }
 0x1e6   :  { %v514_v39 = vadd.f32 %v1128_v12, %v491_v34  ;;  %882 = vmatpush3.bf16.msra.mxu0 %v881_v23  ;;  %v729_v23 = vld [vmem:[%s1196_s7] ss:$0 sm:$0xff] }
 0x1e7   :  { %v887_v40 = vpack.c.bf16 %v516_v36, %v515_v35  ;;  %883 = vmatprep.subr.bf16.mxu0 %v955_v63 }
 0x1e8   :  { %v884_v41 = vpack.c.bf16 %v514_v39, %v513_v38  ;;  %v825_v42 = vpop.f32.mrb[8].mxu1 }
 0x1e9   :  { %v496_v43 = vmul.f32 %v825_v42, %v459_v33  ;;  %v359_v44 = vpop.f32.mrb[9].mxu1 }
 0x1ea   :  { %v494_v46 = vmul.f32 %v449_v20, %v359_v44  ;;  %v826_v47 = vpop.f32.mrb[10].mxu1  ;;  %885 = vmatpush3.bf16.msra.mxu0 %v884_v41 }
 0x1eb   :  { %v497_v48 = vmul.f32 %v826_v47, %v464_v37  ;;  %v362_v49 = vpop.f32.mrb[11].mxu1  ;;  %886 = vmatprep.subr.bf16.mxu0 %v955_v63  ;;  %v519_v52 = vadd.f32 %v1128_v12, %v496_v43 }
 0x1ec   :  { %v495_v51 = vmul.f32 %v454_v24, %v362_v49  ;;  %v517_v54 = vadd.f32 %v1128_v12, %v494_v46 }
 0x1ed   :  { %v520_v53 = vadd.f32 %v1128_v12, %v497_v48 }
 0x1ee   :  { %v518_v55 = vadd.f32 %v1128_v12, %v495_v51  ;;  %888 = vmatpush3.bf16.msra.mxu0 %v887_v40 }
 0x1ef   :  { %v893_v56 = vpack.c.bf16 %v520_v53, %v519_v52  ;;  %889 = vmatprep.subr.bf16.mxu0 %v955_v63 }
 0x1f0   :  { %v890_v58 = vpack.c.bf16 %v518_v55, %v517_v54  ;;  %v829_v59 = vpop.f32.mrb[12].mxu1 }
 0x1f1   :  { %v500_v60 = vmul.f32 %v829_v59, %v479_v57  ;;  %v375_v61 = vpop.f32.mrb[13].mxu1 }
 0x1f2   :  { %v498_v1 = vmul.f32 %v469_v45, %v375_v61  ;;  %v830_v2 = vpop.f32.mrb[14].mxu1  ;;  %891 = vmatpush3.bf16.msra.mxu0 %v890_v58 }
 0x1f3   :  { %v501_v3 = vmul.f32 %v830_v2, %v484_v62  ;;  %v378_v4 = vpop.f32.mrb[15].mxu1  ;;  %892 = vmatprep.subr.bf16.mxu0 %v955_v63  ;;  %v523_v6 = vadd.f32 %v1128_v12, %v500_v60 }
 0x1f4   :  { %v499_v5 = vmul.f32 %v474_v50, %v378_v4  ;;  %v521_v8 = vadd.f32 %v1128_v12, %v498_v1 }
 0x1f5   :  { %v524_v7 = vadd.f32 %v1128_v12, %v501_v3 }
 0x1f6   :  { %v522_v9 = vadd.f32 %v1128_v12, %v499_v5  ;;  %894 = vmatpush3.bf16.msra.mxu0 %v893_v56  ;;  %v604_v12 = vld [vmem:[%s1195_s6] sm:$0xff]  ;;  %s696_s6 = sshll.u32 %s958_s4, 4  ;;  %s697_s6 = int_to_ptr.vmem [resolvable:$true] %s696_s6 }
 0x1f7   :  { %v899_v10 = vpack.c.bf16 %v524_v7, %v523_v6  ;;  %895 = vmatprep.subr.bf16.mxu0 %v955_v63  ;;  %v902_v15 = vpack.c.bf16 %v605_v14, %v604_v12  ;;  %s930_s15 = scalar_lea.vmem %s697_s6, 32  ;;  %p935_p1 = scmp.lt.s32.totalorder %s697_s6, %s697_s6 }
 0x1f8   :  { %v896_v11 = vpack.c.bf16 %v522_v9, %v521_v8  ;;  %p931_p0 = scmp.ne.s32.totalorder %s697_s6, %s930_s15  ;;  %p936_p2 = scmp.lt.s32.totalorder %s930_s15, %s930_s15 }
 0x1fa   :  { %897 = vmatpush3.bf16.msra.mxu0 %v896_v11  ;;  %p937_p3 = por %p936_p2, %p935_p1 }
 0x1fb   :  { %898 = vmatprep.subr.bf16.mxu0 %v955_v63 }
 0x1fc   :  { %p938_p4 = pnand %p937_p3, %p931_p0 }
 0x1fe   :  { %900 = vmatpush3.bf16.msra.mxu0 %v899_v10 }
 0x1ff   :  { %901 = vmatprep.subr.bf16.mxu0 %v955_v63 }
 0x201   :  { %864 = vmatmul.mubr.f32.vlgmr.msra.gmra.mrb[16].mxu0 %v526_v13 }
 0x202   :  { %874 = vmatprep.mubr.msk.f32.mxu0 %vm957_vm2, %v956_v0  ;;  %903 = vmatpush3.bf16.msra.mxu0 %v902_v15  ;;  %v525_v0 = vld [vmem:[#allocation2] sm:$0x3] }
 0x203   :  { %904 = vmatprep.subr.bf16.mxu0 %v955_v63 }
 0x206   :  { %906 = vmatpush3.bf16.msra.mxu0 %v905_v18 }
 0x2d4   :  { %v593_v19 = vpop.f32.mrb[16].mxu0 }
 0x2d5   :  { %v597_v20 = vadd.f32 %v593_v19, %v525_v0  ;;  %v865_v21 = vpop.f32.mrb[17].mxu0 }
 0x2d7   :  { %599 = vst.msk [vmem:[#allocation2] sm:$0x3] %vm35_vm1, %v597_v20 }
 0x2de   :  { %v603_v22 = vld [vmem:[#allocation2] sm:$0x3] }
 0x2df   :  { %875 = vmatmul.mubr.msk.f32.vlgmr.msra.gmra.mrb[18].mxu0 %vm99_vm0, %v603_v22 }
 0x3b2   :  { %v684_v24 = vpop.f32.mrb[18].mxu0 }
 0x3b3   :  { %v685_v25 = vadd.f32 %v729_v23, %v684_v24  ;;  %v876_v63 = vpop.f32.mrb[19].mxu0 }
 0x3b5   :  { %689 = vst.msk [vmem:[#allocation3] sm:$0x3] %vm688_vm3, %v685_v25 }
 0x3b6   :  { %941 = shalt.err (!%p938_p4)
}
 0x3b7   :  { %s942_s18 = scalar_lea.hbm %s1197_s8, 32 }
 0x3b8   :  { %p943_p5 = scmp.ne.s32.totalorder %s1197_s8, %s942_s18  ;;  %p946_p6 = scmp.lt.u32.totalorder %s942_s18, %s1197_s8 }
 0x3ba   :  { %p948_p7 = pnand %p946_p6, %p943_p5 }
 0x3bc   :  { %951 = shalt.err (!%p948_p7)
}
 0x3bd   :  { %699 = dma.vmem_to_hbm [thread:$0]  %s697_s6, 32, %s1197_s8, [#allocation4]  }
 0x3be   :  { %952 = dma.done.wait [#allocation4], 32  }
 0x3bf   :  { %953 = vsyncadd [#allocation4], 4294967264 }
 0x3c0   :  { %703 = vsyncpa [#allocation4], 1 }

</bundles_post_ra>
